<compile_context>
chip_gen: v5e
topology: v5e:2x2
jax: 0.10.0
libtpu: 0.0.40
codegen_flags: <defaults>
</compile_context>

<pallas_src>
import jax
import jax.numpy as jnp
from jax import lax
from jax.experimental import pallas as pl
from jax.experimental.pallas import tpu as pltpu


def network_kernel(x_ref, w1_ref, b1_ref, w2_ref, out_ref, h_ref):
    # fc1 (+ folded ones column) + ReLU: MXU matmul, VPU add/max, f32 accumulate.
    x = x_ref[...]                                              # (bm, dim)
    h = jnp.maximum(
        jnp.dot(x, w1_ref[...], preferred_element_type=jnp.float32)
        + b1_ref[...],
        0.0,
    )                                                           # (bm, hp1) f32; last col == 1.0
    h_ref[...] = h.astype(h_ref.dtype)

    # fc2 (no bias): (1, hp1) x (bm, hp1)^T on the MXU -> lane-dense (1, bm) row.
    out_ref[...] = lax.dot_general(
        w2_ref[...], h,
        dimension_numbers=(((1,), (1,)), ((), ())),
        preferred_element_type=jnp.float32,
    ).astype(out_ref.dtype)


def _round_up(n, m):
    return ((n + m - 1) // m) * m


def _num_tensorcores():
    """Heuristic: v7x chips have 2 TensorCores; v5e/v6e have 1."""
    try:
        kind = jax.devices()[0].device_kind.lower()
    except Exception:
        return 1
    return 2 if ("v7" in kind or "7x" in kind) else 1


def network_forward(x, w1_t, b1, w2_t, *, block_m=2048, out_dtype=jnp.float32):
    """Forward pass of PlugTS.Network.

    x    : (B, dim)        input batch
    w1_t : (dim, hidden)   fc1 weight, pre-transposed
    b1   : (hidden,)       fc1 bias
    w2_t : (hidden+1, 1)   fc2 weight, pre-transposed (no bias)
    returns (out, h) with out: (B, 1), h: (B, hidden+1)  (ones column appended)

    out_dtype=jnp.bfloat16 halves the dominant output HBM traffic (compute
    stays f32); the default f32 matches the PyTorch reference numerics.
    """
    B, dim = x.shape
    hidden = w1_t.shape[1]
    hp1 = hidden + 1
    p_dtype = w1_t.dtype

    # Fold "cat ones" into fc1: zero weight column + bias 1.0 -> relu(0*x+1)=1.
    w1_ext = jnp.concatenate([w1_t, jnp.zeros((dim, 1), p_dtype)], axis=1)      # (dim, hp1)
    b1_ext = jnp.concatenate([b1.reshape(1, hidden),
                              jnp.ones((1, 1), b1.dtype)], axis=1)              # (1, hp1)
    w2_row = w2_t.reshape(1, hp1)                                               # (1, hp1)

    # ---- Tile selection (bm is always a multiple of 128 so the lane-dense
    # (1, bm) out block is legal) ------------------------------------------------
    block_m = max(128, _round_up(block_m, 128))
    n_tc = _num_tensorcores()

    if B < 128:
        # Tiny batch: one padded 128-row tile; pad/slice copies are < ~20 KiB.
        bm, n_blocks, b_pad = 128, 1, 128
    else:
        # Large batch: bm never exceeds B; the last grid block may be partial
        # (OOB reads garbage, OOB writes dropped) -> no full pad/slice copies.
        bm = min(block_m, (B // 128) * 128)
        n_blocks = pl.cdiv(B, bm)
        # v7x only: give both TensorCores a block, but never below 512 rows each.
        if n_tc > 1 and n_blocks < n_tc and B >= n_tc * 512:
            bm = max(512, _round_up(pl.cdiv(B, n_tc), 128))
            n_blocks = pl.cdiv(B, bm)
        b_pad = B

    x_in = x if b_pad == B else jnp.pad(x, ((0, b_pad - B), (0, 0)))

    out_bytes = jnp.dtype(out_dtype).itemsize
    cost = pl.CostEstimate(
        flops=2 * B * hp1 * (dim + 1),
        transcendentals=0,
        bytes_accessed=int(x.dtype.itemsize * B * dim
                           + out_bytes * B * (hp1 + 1)
                           + p_dtype.itemsize * hp1 * (dim + 2)),
    )

    out_row, h = pl.pallas_call(
        network_kernel,
        out_shape=(
            jax.ShapeDtypeStruct((1, b_pad), out_dtype),      # fc2 output, lane-dense row
            jax.ShapeDtypeStruct((b_pad, hp1), out_dtype),    # h (with ones column)
        ),
        grid=(n_blocks,),
        in_specs=[
            pl.BlockSpec((bm, dim), lambda i: (i, 0)),        # x tile (per-step DMA)
            pl.BlockSpec((dim, hp1), lambda i: (0, 0)),       # fc1 W^T (+zero col), resident
            pl.BlockSpec((1, hp1), lambda i: (0, 0)),         # fc1 bias (+1.0), resident
            pl.BlockSpec((1, hp1), lambda i: (0, 0)),         # fc2 W as a row, resident
        ],
        out_specs=(
            pl.BlockSpec((1, bm), lambda i: (0, i)),          # fc2 output (lane window)
            pl.BlockSpec((bm, hp1), lambda i: (i, 0)),        # h tile
        ),
        compiler_params=pltpu.CompilerParams(
            dimension_semantics=("parallel",)),
        cost_estimate=cost,
    )(x_in, w1_ext, b1_ext, w2_row)

    if b_pad != B:
        out_row = out_row[:, :B]
        h = h[:B]
    # (1, B) -> (B, 1): order-preserving reshape of B scalars (tiny copy).
    return out_row.reshape(B, 1), h


def network_forward_ref(x, w1_t, b1, w2_t):
    h = jnp.maximum(x @ w1_t + b1.reshape(1, -1), 0.0)
    h = jnp.concatenate([h, jnp.ones((x.shape[0], 1), h.dtype)], axis=1)
    return h @ w2_t, h


if __name__ == "__main__":
    DIM, HIDDEN = 16, 32

    key = jax.random.PRNGKey(0)
    kw1, kb1, kw2 = jax.random.split(key, 3)

    # Parameters (synthetic; shapes match nn.Linear(dim, hidden) and
    # nn.Linear(hidden+1, 1, bias=False)), stored pre-transposed for the kernel.
    w1_t = jax.random.normal(kw1, (DIM, HIDDEN), dtype=jnp.float32) * 0.1
    b1 = jax.random.normal(kb1, (HIDDEN,), dtype=jnp.float32) * 0.1
    w2_t = jax.random.normal(kw2, (HIDDEN + 1, 1), dtype=jnp.float32) * 0.1

    def check(batch, **kw):
        x = jax.random.normal(jax.random.fold_in(key, batch), (batch, DIM),
                              dtype=jnp.float32)
        out, h = network_forward(x, w1_t, b1, w2_t, **kw)
        jax.block_until_ready((out, h))
        out_ref, h_ref = network_forward_ref(x, w1_t, b1, w2_t)
        assert out.shape == (batch, 1) and h.shape == (batch, HIDDEN + 1)
        assert jnp.allclose(out, out_ref, atol=1e-5, rtol=1e-4), ("out", batch)
        assert jnp.allclose(h, h_ref, atol=1e-5, rtol=1e-4), ("h", batch)

    check(20)                 # tiny ragged batch: single padded 128-row tile
    check(64)                 # tiny even batch:   single padded 128-row tile
    check(256)                # exact single 256-row block, no pad / no slice
    check(300, block_m=128)   # 3 grid steps with a partial last block, no pad / no slice

    print("KERNEL_OK")
</pallas_src>

<mosaic_0001>
module attributes {stable_mosaic.version = 11 : i64} {
  func.func @network_kernel(%arg0: i32, %arg1: memref<128x16xf32, #tpu.memory_space<vmem>>, %arg2: memref<16x33xf32, #tpu.memory_space<vmem>>, %arg3: memref<1x33xf32, #tpu.memory_space<vmem>>, %arg4: memref<1x33xf32, #tpu.memory_space<vmem>>, %arg5: memref<1x128xf32, #tpu.memory_space<vmem>>, %arg6: memref<128x33xf32, #tpu.memory_space<vmem>>) attributes {dimension_semantics = [#tpu.dimension_semantics<parallel>], iteration_bounds = array<i64: 1>, scalar_prefetch = 0 : i64, scratch_operands = 0 : i64, tpu.core_type = #tpu.core_type<tc>, window_params = [{transform_indices = @transform_0, window_bounds = array<i64: 128, 16>}, {pipeline_mode = #tpu.pipeline_mode<synchronous>, transform_indices = @transform_1, window_bounds = array<i64: 16, 33>}, {pipeline_mode = #tpu.pipeline_mode<synchronous>, transform_indices = @transform_2, window_bounds = array<i64: 1, 33>}, {pipeline_mode = #tpu.pipeline_mode<synchronous>, transform_indices = @transform_3, window_bounds = array<i64: 1, 33>}, {transform_indices = @transform_4, window_bounds = array<i64: 1, 128>}, {transform_indices = @transform_5, window_bounds = array<i64: 128, 33>}]} {
    %c0 = arith.constant 0 : index
    %c0_0 = arith.constant 0 : index
    %0 = vector.load %arg1[%c0, %c0_0] : memref<128x16xf32, #tpu.memory_space<vmem>>, vector<128x16xf32>
    %c0_1 = arith.constant 0 : index
    %c0_2 = arith.constant 0 : index
    %1 = vector.load %arg2[%c0_1, %c0_2] : memref<16x33xf32, #tpu.memory_space<vmem>>, vector<16x33xf32>
    %cst = arith.constant dense<0.000000e+00> : vector<128x33xf32>
    %2 = tpu.matmul %0, %1, %cst {dimension_numbers = #tpu.dot_dimension_numbers<[1], [0], [0], [1], [0, 0, 1, 1], [], []>} : vector<128x16xf32>, vector<16x33xf32>, vector<128x33xf32> -> vector<128x33xf32>
    %c0_3 = arith.constant 0 : index
    %c0_4 = arith.constant 0 : index
    %3 = vector.load %arg3[%c0_3, %c0_4] : memref<1x33xf32, #tpu.memory_space<vmem>>, vector<1x33xf32>
    %4 = vector.broadcast %3 : vector<1x33xf32> to vector<128x33xf32>
    %5 = arith.addf %2, %4 : vector<128x33xf32>
    %cst_5 = arith.constant 0.000000e+00 : f32
    %6 = vector.broadcast %cst_5 : f32 to vector<128x33xf32>
    %7 = arith.maximumf %5, %6 : vector<128x33xf32>
    %c0_6 = arith.constant 0 : index
    %c0_7 = arith.constant 0 : index
    %8 = vector.load %arg6[%c0_6, %c0_7] : memref<128x33xf32, #tpu.memory_space<vmem>>, vector<128x33xf32>
    tpu.vector_store %arg6[%c0_6, %c0_7], %7 {strides = array<i32>} : memref<128x33xf32, #tpu.memory_space<vmem>>, vector<128x33xf32>,
    %c0_8 = arith.constant 0 : index
    %c0_9 = arith.constant 0 : index
    %9 = vector.load %arg4[%c0_8, %c0_9] : memref<1x33xf32, #tpu.memory_space<vmem>>, vector<1x33xf32>
    %cst_10 = arith.constant dense<0.000000e+00> : vector<1x128xf32>
    %10 = tpu.matmul %9, %7, %cst_10 {dimension_numbers = #tpu.dot_dimension_numbers<[1], [1], [0], [0], [0, 0, 1, 0], [], []>} : vector<1x33xf32>, vector<128x33xf32>, vector<1x128xf32> -> vector<1x128xf32>
    %c0_11 = arith.constant 0 : index
    %c0_12 = arith.constant 0 : index
    %11 = vector.load %arg5[%c0_11, %c0_12] : memref<1x128xf32, #tpu.memory_space<vmem>>, vector<1x128xf32>
    tpu.vector_store %arg5[%c0_11, %c0_12], %10 {strides = array<i32>} : memref<1x128xf32, #tpu.memory_space<vmem>>, vector<1x128xf32>,
    return
  }
  func.func @transform_0(%arg0: i32) -> (i32, i32) {
    %c0_i32 = arith.constant 0 : i32
    %c0_i32_0 = arith.constant 0 : i32
    return %arg0, %c0_i32 : i32, i32
  }
  func.func @transform_1(%arg0: i32) -> (i32, i32) {
    %c0_i32 = arith.constant 0 : i32
    %c0_i32_0 = arith.constant 0 : i32
    %c0_i32_1 = arith.constant 0 : i32
    return %c0_i32, %c0_i32_0 : i32, i32
  }
  func.func @transform_2(%arg0: i32) -> (i32, i32) {
    %c0_i32 = arith.constant 0 : i32
    %c0_i32_0 = arith.constant 0 : i32
    %c0_i32_1 = arith.constant 0 : i32
    return %c0_i32, %c0_i32_0 : i32, i32
  }
  func.func @transform_3(%arg0: i32) -> (i32, i32) {
    %c0_i32 = arith.constant 0 : i32
    %c0_i32_0 = arith.constant 0 : i32
    %c0_i32_1 = arith.constant 0 : i32
    return %c0_i32, %c0_i32_0 : i32, i32
  }
  func.func @transform_4(%arg0: i32) -> (i32, i32) {
    %c0_i32 = arith.constant 0 : i32
    %c0_i32_0 = arith.constant 0 : i32
    return %c0_i32, %arg0 : i32, i32
  }
  func.func @transform_5(%arg0: i32) -> (i32, i32) {
    %c0_i32 = arith.constant 0 : i32
    %c0_i32_0 = arith.constant 0 : i32
    return %arg0, %c0_i32 : i32, i32
  }
}

</mosaic_0001>

<bundles_post_ra>
// kernel: tpu_custom_call.1
= control target key start
LH: loop header
LB: loop body
LE: loop exit
PB: predicated region body
PF: predicated region fallthrough
CT: control target
= control target key end

     0   :  { %vm42_vm0 = vcmask 130048   ;;  %s570_s0 = inlined_call_operand.vmem [shape: f32[128,16], index: 0, kind: input, shape index: {}]   ;;  %s571_s1 = inlined_call_operand.vmem [shape: f32[16,33], index: 1, kind: input, shape index: {}]   ;;  %s572_s2 = inlined_call_operand.vmem [shape: f32[1,33], index: 2, kind: input, shape index: {}]   ;;  %s573_s3 = inlined_call_operand.vmem [shape: f32[1,33], index: 3, kind: input, shape index: {}]   ;;  %s574_s4 = inlined_call_operand.hbm [shape: f32[1,128], index: 4, kind: output, shape index: {0}]   ;;  %s575_s5 = inlined_call_operand.vmem [shape: f32[128,33], index: 5, kind: output, shape index: {1}]  }
   0x1   :  { %v37_v0 = vld [vmem:[%s571_s1 + $0x8] sm:$0xff]  ;;  %v36_v1 = vld [vmem:[%s571_s1] sm:$0xff]  ;;  %v26_v2 = vld [vmem:[%s570_s0 + $0x30] sm:$0xff] }
   0x2   :  { %315 = vmatpush.msra.mxu2 %v37_v0  ;;  %316 = vmatpush.msra.mxu3 %v37_v0  ;;  %v33_v3 = vld [vmem:[%s570_s0 + $0x68] sm:$0xff] }
   0x3   :  { %105 = vmatpush.msra.mxu0 %v37_v0 }
   0x4   :  { %317 = vmatpush.msra.mxu2 %v36_v1  ;;  %318 = vmatpush.msra.mxu3 %v36_v1 }
   0x5   :  { %11 = vsyncpa [#allocation3], 0  ;;  %288 = vmatmul.msk.f32.vlgmr.msra.gmra.mxu2 %vm42_vm0, %v26_v2  ;;  %295 = vmatmul.msk.f32.vlgmr.msra.gmra.mxu3 %vm42_vm0, %v33_v3  ;;  %v27_v4 = vld [vmem:[%s570_s0 + $0x38] sm:$0xff]  ;;  %v34_v5 = vld [vmem:[%s570_s0 + $0x70] sm:$0xff]  ;;  %vm172_vm1 = vcmask 269312   ;;  %s347_s7 = smov [#allocation2]  }
   0x6   :  { %106 = vmatpush.msra.mxu0 %v36_v1  ;;  %v20_v6 = vld [vmem:[%s570_s0] sm:$0xff]  ;;  %v35_v8 = vld [vmem:[%s570_s0 + $0x78] sm:$0xff]  ;;  %v21_v9 = vld [vmem:[%s570_s0 + $0x8] sm:$0xff]  ;;  %s267_s8 = sshll.u32 %s347_s7, 4  ;;  %s269_s11 = sshll.u32 %s574_s4, 4  ;;  %s268_s8 = int_to_ptr.vmem [resolvable:$true] %s267_s8  ;;  %s270_s11 = int_to_ptr.hbm [resolvable:$true] %s269_s11 }
   0x7   :  { %282 = vmatmul.msk.f32.vlgmr.msra.gmra.mxu0 %vm42_vm0, %v20_v6  ;;  %v28_v7 = vld [vmem:[%s570_s0 + $0x40] sm:$0xff]  ;;  %v29_v10 = vld [vmem:[%s570_s0 + $0x48] sm:$0xff]  ;;  %v22_v11 = vld [vmem:[%s570_s0 + $0x10] sm:$0xff] }
   0x8   :  { %v30_v12 = vld [vmem:[%s570_s0 + $0x50] sm:$0xff]  ;;  %v23_v13 = vld [vmem:[%s570_s0 + $0x18] sm:$0xff]  ;;  %v24_v15 = vld [vmem:[%s570_s0 + $0x20] sm:$0xff] }
   0x9   :  { %v31_v14 = vld [vmem:[%s570_s0 + $0x58] sm:$0xff]  ;;  %v32_v16 = vld [vmem:[%s570_s0 + $0x60] sm:$0xff]  ;;  %v25_v17 = vld [vmem:[%s570_s0 + $0x28] sm:$0xff] }
   0xa   :  { %v451_v18 = vld [vmem:[%s572_s2] ss:$0 sm:$0xff] }
   0xb   :  { %v189_v3 = vld [vmem:[%s573_s3] sm:$0x1] }
   0xd   :  { %289 = vmatmul.msk.f32.gmra.mxu2 %vm42_vm0, %v27_v4  ;;  %296 = vmatmul.msk.f32.gmra.mxu3 %vm42_vm0, %v34_v5 }
   0xf   :  { %283 = vmatmul.msk.f32.gmra.mxu0 %vm42_vm0, %v21_v9 }
  0x15   :  { %290 = vmatmul.msk.f32.gmra.mxu2 %vm42_vm0, %v28_v7  ;;  %297 = vmatmul.msk.f32.gmra.mxu3 %vm42_vm0, %v35_v8 }
  0x17   :  { %284 = vmatmul.msk.f32.gmra.mxu0 %vm42_vm0, %v22_v11 }
  0x1d   :  { %291 = vmatmul.msk.f32.gmra.mxu2 %vm42_vm0, %v29_v10 }
  0x1f   :  { %285 = vmatmul.msk.f32.gmra.mxu0 %vm42_vm0, %v23_v13 }
  0x25   :  { %292 = vmatmul.msk.f32.gmra.mxu2 %vm42_vm0, %v30_v12 }
  0x27   :  { %286 = vmatmul.msk.f32.gmra.mxu0 %vm42_vm0, %v24_v15 }
  0x2d   :  { %293 = vmatmul.msk.f32.gmra.mxu2 %vm42_vm0, %v31_v14 }
  0x2f   :  { %287 = vmatmul.msk.f32.gmra.mxu0 %vm42_vm0, %v25_v17 }
  0x35   :  { %294 = vmatmul.msk.f32.gmra.mxu2 %vm42_vm0, %v32_v16 }
  0x84   :  { %v108_v25 = vpop.f32.mrf.mxu0 }
  0x85   :  { %v465_v26 = vadd.f32 %v451_v18, %v108_v25 }
  0x87   :  { %v156_v27 = vmax.f32 %v465_v26, 0.0 }
  0x88   :  { %v126_v19 = vpop.f32.mrf.mxu2  ;;  %v147_v20 = vpop.f32.mrf.mxu3 }
  0x89   :  { %v454_v21 = vadd.f32 %v451_v18, %v126_v19  ;;  %v148_v22 = vadd.f32 %v451_v18, %v147_v20  ;;  %173 = vst.msk [vmem:[%s575_s5] sm:$0xff] %vm172_vm1, %v156_v27 }
  0x8b   :  { %v162_v23 = vmax.f32 %v454_v21, 0.0  ;;  %v169_v24 = vmax.f32 %v148_v22, 0.0 }
  0x8c   :  { %v111_v34 = vpop.f32.mrf.mxu0 }
  0x8d   :  { %179 = vst.msk [vmem:[%s575_s5 + $0x30] sm:$0xff] %vm172_vm1, %v162_v23  ;;  %v112_v35 = vadd.f32 %v451_v18, %v111_v34 }
  0x8e   :  { %186 = vst.msk [vmem:[%s575_s5 + $0x68] sm:$0xff] %vm172_vm1, %v169_v24 }
  0x8f   :  { %v157_v36 = vmax.f32 %v112_v35, 0.0 }
  0x90   :  { %v129_v28 = vpop.f32.mrf.mxu2  ;;  %v150_v29 = vpop.f32.mrf.mxu3 }
  0x91   :  { %v130_v30 = vadd.f32 %v451_v18, %v129_v28  ;;  %v151_v31 = vadd.f32 %v451_v18, %v150_v29  ;;  %174 = vst.msk [vmem:[%s575_s5 + $0x8] sm:$0xff] %vm172_vm1, %v157_v36 }
  0x93   :  { %v163_v32 = vmax.f32 %v130_v30, 0.0  ;;  %v170_v33 = vmax.f32 %v151_v31, 0.0 }
  0x94   :  { %v114_v43 = vpop.f32.mrf.mxu0 }
  0x95   :  { %180 = vst.msk [vmem:[%s575_s5 + $0x38] sm:$0xff] %vm172_vm1, %v163_v32  ;;  %v115_v44 = vadd.f32 %v451_v18, %v114_v43 }
  0x96   :  { %187 = vst.msk [vmem:[%s575_s5 + $0x70] sm:$0xff] %vm172_vm1, %v170_v33 }
  0x97   :  { %v158_v45 = vmax.f32 %v115_v44, 0.0 }
  0x98   :  { %v132_v37 = vpop.f32.mrf.mxu2  ;;  %v153_v38 = vpop.f32.mrf.mxu3 }
  0x99   :  { %v133_v39 = vadd.f32 %v451_v18, %v132_v37  ;;  %v154_v40 = vadd.f32 %v451_v18, %v153_v38  ;;  %175 = vst.msk [vmem:[%s575_s5 + $0x10] sm:$0xff] %vm172_vm1, %v158_v45 }
  0x9b   :  { %v164_v41 = vmax.f32 %v133_v39, 0.0  ;;  %v171_v42 = vmax.f32 %v154_v40, 0.0 }
  0x9c   :  { %v117_v49 = vpop.f32.mrf.mxu0 }
  0x9d   :  { %181 = vst.msk [vmem:[%s575_s5 + $0x40] sm:$0xff] %vm172_vm1, %v164_v41  ;;  %298 = vmatpush.xpose.msk.msra.mxu1 %vm172_vm1, %v171_v42  ;;  %v118_v50 = vadd.f32 %v451_v18, %v117_v49 }
  0x9e   :  { %188 = vst.msk [vmem:[%s575_s5 + $0x78] sm:$0xff] %vm172_vm1, %v171_v42 }
  0x9f   :  { %v159_v51 = vmax.f32 %v118_v50, 0.0 }
  0xa0   :  { %v135_v46 = vpop.f32.mrf.mxu2 }
  0xa1   :  { %v136_v47 = vadd.f32 %v451_v18, %v135_v46  ;;  %299 = vmatpush.xpose.msk.msra.mxu1 %vm172_vm1, %v170_v33  ;;  %176 = vst.msk [vmem:[%s575_s5 + $0x18] sm:$0xff] %vm172_vm1, %v159_v51 }
  0xa3   :  { %v165_v48 = vmax.f32 %v136_v47, 0.0 }
  0xa4   :  { %v120_v55 = vpop.f32.mrf.mxu0 }
  0xa5   :  { %182 = vst.msk [vmem:[%s575_s5 + $0x48] sm:$0xff] %vm172_vm1, %v165_v48  ;;  %300 = vmatpush.xpose.msk.msra.mxu1 %vm172_vm1, %v169_v24  ;;  %v121_v56 = vadd.f32 %v451_v18, %v120_v55 }
  0xa7   :  { %v160_v57 = vmax.f32 %v121_v56, 0.0 }
  0xa8   :  { %v138_v52 = vpop.f32.mrf.mxu2 }
  0xa9   :  { %v139_v53 = vadd.f32 %v451_v18, %v138_v52  ;;  %177 = vst.msk [vmem:[%s575_s5 + $0x20] sm:$0xff] %vm172_vm1, %v160_v57 }
  0xab   :  { %v166_v54 = vmax.f32 %v139_v53, 0.0 }
  0xac   :  { %v123_v61 = vpop.f32.mrf.mxu0 }
  0xad   :  { %183 = vst.msk [vmem:[%s575_s5 + $0x50] sm:$0xff] %vm172_vm1, %v166_v54  ;;  %v124_v62 = vadd.f32 %v451_v18, %v123_v61 }
  0xaf   :  { %v161_v63 = vmax.f32 %v124_v62, 0.0 }
  0xb0   :  { %v141_v58 = vpop.f32.mrf.mxu2 }
  0xb1   :  { %v142_v59 = vadd.f32 %v451_v18, %v141_v58  ;;  %178 = vst.msk [vmem:[%s575_s5 + $0x28] sm:$0xff] %vm172_vm1, %v161_v63 }
  0xb3   :  { %v167_v60 = vmax.f32 %v142_v59, 0.0 }
  0xb5   :  { %184 = vst.msk [vmem:[%s575_s5 + $0x58] sm:$0xff] %vm172_vm1, %v167_v60 }
  0xb8   :  { %v144_v0 = vpop.f32.mrf.mxu2 }
  0xb9   :  { %v145_v1 = vadd.f32 %v451_v18, %v144_v0 }
  0xbb   :  { %v168_v2 = vmax.f32 %v145_v1, 0.0 }
  0xbd   :  { %185 = vst.msk [vmem:[%s575_s5 + $0x60] sm:$0xff] %vm172_vm1, %v168_v2  ;;  %301 = vmatpush.xpose.msk.msra.mxu1 %vm172_vm1, %v168_v2 }
  0xc1   :  { %302 = vmatpush.xpose.msk.msra.mxu1 %vm172_vm1, %v167_v60 }
  0xc5   :  { %303 = vmatpush.xpose.msk.msra.mxu1 %vm172_vm1, %v166_v54 }
  0xc9   :  { %304 = vmatpush.xpose.msk.msra.mxu1 %vm172_vm1, %v165_v48 }
  0xcd   :  { %305 = vmatpush.xpose.msk.msra.mxu1 %vm172_vm1, %v164_v41 }
  0xd1   :  { %306 = vmatpush.xpose.msk.msra.mxu1 %vm172_vm1, %v163_v32 }
  0xd5   :  { %307 = vmatpush.xpose.msk.msra.mxu1 %vm172_vm1, %v162_v23 }
  0xd9   :  { %308 = vmatpush.xpose.msk.msra.mxu1 %vm172_vm1, %v161_v63 }
  0xdd   :  { %309 = vmatpush.xpose.msk.msra.mxu1 %vm172_vm1, %v160_v57 }
  0xe1   :  { %310 = vmatpush.xpose.msk.msra.mxu1 %vm172_vm1, %v159_v51 }
  0xe5   :  { %311 = vmatpush.xpose.msk.msra.mxu1 %vm172_vm1, %v158_v45 }
  0xe9   :  { %312 = vmatpush.xpose.msk.msra.mxu1 %vm172_vm1, %v157_v36 }
  0xed   :  { %313 = vmatpush.xpose.msk.msra.mxu1 %vm172_vm1, %v156_v27 }
  0xf0   :  { %314 = vmatmul.msk.f32.vlgmr.msra.gmra.mxu1 %vm172_vm1, %v189_v3 }
 0x16d   :  { %v258_v4 = vpop.f32.mrf.mxu1 }
 0x16e   :  { %261 = vst [vmem:[#allocation2] sm:$0x1] %v258_v4 }
 0x16f   :  { %272 = dma.vmem_to_hbm [thread:$0]  %s268_s8, 16, %s270_s11, [#allocation3]  }
 0x170   :  { %345 = dma.done.wait [#allocation3], 16  }
 0x171   :  { %346 = vsyncadd [#allocation3], 4294967280 }
 0x172   :  { %281 = vsyncpa [#allocation3], 1 }

</bundles_post_ra>
